<compile_context>
chip_gen: v5e
topology: v5e:2x2
jax: 0.10.0
libtpu: 0.0.40
codegen_flags: <defaults>
</compile_context>

<pallas_src>
import jax
import jax.numpy as jnp
from jax.experimental import pallas as pl
from jax.experimental.pallas import tpu as pltpu


def _round_up(x, m):
    return (x + m - 1) // m * m


def _vmem_capacity_bytes():
    # Generation-derived VMEM capacity (v5e/v6e: 128 MiB; v7x: 64 MiB per TC).
    try:
        return int(pltpu.get_tpu_info().vmem_capacity_bytes)
    except Exception:
        return 64 << 20  # conservative fallback (v7x per-TensorCore VMEM)


def classifier_kernel(x_ref, w_ref, b_ref, o_ref, m_ref, l_ref):
    # x_ref: (TM, D_pad) bf16    w_ref: (D_pad, TN) bf16    b_ref: (1, TN) f32
    # o_ref: (TM, V_pad) out_dtype -- resident across the vocab grid axis
    # m_ref, l_ref: (TM, 1) f32 scratch (running max / running sum of exp)
    j = pl.program_id(1)
    nj = pl.num_programs(1)

    @pl.when(j == 0)
    def _():
        m_ref[...] = jnp.full_like(m_ref, -jnp.inf)
        l_ref[...] = jnp.zeros_like(l_ref)

    # Logits for this vocab block: bf16 MXU matmul with f32 accumulation.
    s = jnp.dot(x_ref[...], w_ref[...],
                preferred_element_type=jnp.float32) + b_ref[...]

    # Online logsumexp update (all f32).
    m_prev = m_ref[...]
    m_new = jnp.maximum(m_prev, jnp.max(s, axis=-1, keepdims=True))
    l_ref[...] = (l_ref[...] * jnp.exp(m_prev - m_new)
                  + jnp.sum(jnp.exp(s - m_new), axis=-1, keepdims=True))
    m_ref[...] = m_new

    # Stash the (unnormalized) logits for this block into the resident output
    # tile (128-aligned dynamic column offset -> unmasked lane-dense stores).
    tn = w_ref.shape[1]
    col0 = pl.multiple_of(j * tn, 128)
    o_ref[:, pl.ds(col0, tn)] = s.astype(o_ref.dtype)

    # Last vocab block: normalize the whole row tile in place.
    @pl.when(j == nj - 1)
    def _():
        lse = m_ref[...] + jnp.log(l_ref[...])
        o_ref[...] = (o_ref[...].astype(jnp.float32) - lse).astype(o_ref.dtype)


def prepare_params(weight, bias):
    """One-time parameter prep (hoisted out of the steady-state call path).

    weight: (vocab, input_dim) f32 (PyTorch nn.Linear layout); bias: (vocab,).
    Returns (w_t, b2d):
      w_t : (D_pad, V_pad) bf16 — transposed, D zero-padded to x128 (lane-dense
            MXU K), V padded to x128.
      b2d : (1, V_pad) f32 — padded vocab entries get -1e30 so their logits
            vanish under softmax and the padding never affects the LSE.
    """
    V, D = weight.shape
    D_pad = _round_up(D, 128)
    V_pad = _round_up(V, 128)
    w_t = jnp.asarray(weight, jnp.float32).T                       # (D, V)
    w_t = jnp.pad(w_t, ((0, D_pad - D), (0, V_pad - V))).astype(jnp.bfloat16)
    b = jnp.pad(jnp.asarray(bias, jnp.float32), (0, V_pad - V),
                constant_values=-1e30)
    return w_t, b.reshape(1, V_pad)


def classifier_forward(x, w_t, b2d, *, vocab=None, out_dtype=jnp.bfloat16,
                       tm=512, tn=2048):
    """x: (batch, seq, input_dim).  w_t/b2d from prepare_params.
    Returns log-probs of shape (batch, seq, vocab) in `out_dtype`."""
    batch, seq, input_dim = x.shape
    D_pad, V_pad = w_t.shape
    V = V_pad if vocab is None else vocab
    M = batch * seq
    out_bytes = jnp.dtype(out_dtype).itemsize

    # Flatten rows, cast to bf16 for the MXU, zero-pad the feature dim.
    x2d = x.reshape(M, input_dim).astype(jnp.bfloat16)
    if D_pad != input_dim:
        x2d = jnp.pad(x2d, ((0, 0), (0, D_pad - input_dim)))

    cap = _vmem_capacity_bytes()
    budget = (3 * cap) // 4  # headroom for compiler-internal scratch

    def vmem_needed(TM, TN):
        w = 2 * D_pad * TN * 2             # weight blocks (default 2x buffered)
        bv = 2 * 8 * TN * 4                # bias blocks (sublane-padded to 8)
        xin = 2 * TM * D_pad * 2           # x tiles
        out = 2 * TM * V_pad * out_bytes   # resident full-V output tile
        scr = 2 * TM * 128 * 4             # m / l scratch (lane-padded)
        tmp = TM * V_pad * 4 + 2 * TM * TN * 4   # in-kernel f32 temporaries
        return w + bv + xin + out + scr + tmp

    # Vocab tile: prefer full-V residency (weight DMA'd exactly once); otherwise
    # stream MXU-friendly TN-wide vocab blocks (multiple of 128 dividing V_pad).
    TN = V_pad
    if vmem_needed(8, V_pad) > budget:
        TN = 128
        for cand in range(min(_round_up(tn, 128), V_pad), 127, -128):
            if V_pad % cand == 0 and vmem_needed(8, cand) <= budget:
                TN = cand
                break

    # Row tile: multiple of 8; ensure >= 2 row tiles so the "parallel" axis can
    # shard across TensorCores; shrink until it fits the VMEM budget.
    TM = max(8, min(tm, _round_up(M, 8)))
    if M >= 16:
        TM = min(TM, _round_up((M + 1) // 2, 8))
    while TM > 8 and vmem_needed(TM, TN) > budget:
        TM = max(8, _round_up(TM // 2, 8))

    M_pad = _round_up(M, TM)
    if M_pad != M:
        # Padded rows compute logits=bias and are sliced off below (wasted but
        # correct; at most one tile of waste).
        x2d = jnp.pad(x2d, ((0, M_pad - M), (0, 0)))

    grid = (M_pad // TM, V_pad // TN)

    need = vmem_needed(TM, TN)
    vmem_limit = int(min(max(need + (8 << 20), 32 << 20), cap))

    # Advisory cost estimate for XLA's scheduler.
    n_row_tiles = M_pad // TM
    w_reads = 1 if TN == V_pad else n_row_tiles
    flops = 2 * M_pad * D_pad * V_pad
    transcendentals = M_pad * V_pad + 2 * M_pad * (V_pad // TN)
    bytes_accessed = (M_pad * D_pad * 2 + w_reads * D_pad * V_pad * 2
                      + 8 * V_pad * 4 + M_pad * V_pad * out_bytes)

    out2d = pl.pallas_call(
        classifier_kernel,
        out_shape=jax.ShapeDtypeStruct((M_pad, V_pad), out_dtype),
        grid_spec=pltpu.PrefetchScalarGridSpec(
            num_scalar_prefetch=0,
            grid=grid,
            in_specs=[
                pl.BlockSpec((TM, D_pad), lambda i, j: (i, 0)),   # x tile
                pl.BlockSpec((D_pad, TN), lambda i, j: (0, j)),   # weight block
                pl.BlockSpec((1, TN), lambda i, j: (0, j)),       # bias block
            ],
            out_specs=pl.BlockSpec((TM, V_pad), lambda i, j: (i, 0)),
            scratch_shapes=[pltpu.VMEM((TM, 1), jnp.float32),     # running max
                            pltpu.VMEM((TM, 1), jnp.float32)],    # running sum
        ),
        compiler_params=pltpu.CompilerParams(
            dimension_semantics=("parallel", "arbitrary"),
            vmem_limit_bytes=vmem_limit),
        cost_estimate=pl.CostEstimate(
            flops=flops,
            transcendentals=transcendentals,
            bytes_accessed=bytes_accessed),
    )(x2d, w_t, b2d)

    return out2d[:M, :V].reshape(batch, seq, V)


if __name__ == "__main__":
    # Small shapes consistent with the module: word_vocab_size=128, input_dim=32
    batch, seq, input_dim, vocab = 2, 8, 32, 128

    key = jax.random.PRNGKey(0)
    kx, kw, kb = jax.random.split(key, 3)

    x = jax.random.normal(kx, (batch, seq, input_dim), dtype=jnp.float32)
    # Deterministic parameter init (uniform, similar in spirit to nn.Linear default)
    bound = 1.0 / (input_dim ** 0.5)
    weight = jax.random.uniform(kw, (vocab, input_dim), jnp.float32, -bound, bound)
    bias = jax.random.uniform(kb, (vocab,), jnp.float32, -bound, bound)

    # One-time param prep (transpose + padding + bf16 cast, hoisted off the call path).
    w_t, b2d = prepare_params(weight, bias)

    # f32-output path (parity check) and the default bf16-output perf path.
    out_f32 = classifier_forward(x, w_t, b2d, vocab=vocab, out_dtype=jnp.float32)
    out_bf16 = classifier_forward(x, w_t, b2d, vocab=vocab)
    jax.block_until_ready((out_f32, out_bf16))

    assert out_f32.shape == (batch, seq, vocab)
    assert out_bf16.shape == (batch, seq, vocab)
    assert out_bf16.dtype == jnp.bfloat16

    # sanity 1: rows of exp(logprobs) must sum to 1
    row_sums = jnp.sum(jnp.exp(out_f32), axis=-1)
    assert bool(jnp.allclose(row_sums, 1.0, atol=1e-3))

    # sanity 2: matches pure-JAX f32 reference (bf16 matmul -> loose tolerance)
    ref = jax.nn.log_softmax(x @ weight.T + bias, axis=-1)
    err32 = float(jnp.max(jnp.abs(out_f32 - ref)))
    assert bool(jnp.allclose(out_f32, ref, atol=3e-2)), err32
    err16 = float(jnp.max(jnp.abs(out_bf16.astype(jnp.float32) - ref)))
    assert bool(jnp.allclose(out_bf16.astype(jnp.float32), ref, atol=2e-1)), err16

    print("KERNEL_OK")
</pallas_src>

<mosaic_0001>
module attributes {stable_mosaic.version = 11 : i64} {
  func.func @classifier_kernel(%arg0: i32, %arg1: i32, %arg2: memref<8x128xbf16, #tpu.memory_space<vmem>>, %arg3: memref<128x128xbf16, #tpu.memory_space<vmem>>, %arg4: memref<1x128xf32, #tpu.memory_space<vmem>>, %arg5: memref<8x128xf32, #tpu.memory_space<vmem>>, %arg6: memref<8x1xf32, #tpu.memory_space<vmem>>, %arg7: memref<8x1xf32, #tpu.memory_space<vmem>>) attributes {dimension_semantics = [#tpu.dimension_semantics<parallel>, #tpu.dimension_semantics<arbitrary>], iteration_bounds = array<i64: 2, 1>, scalar_prefetch = 0 : i64, scratch_operands = 2 : i64, tpu.core_type = #tpu.core_type<tc>, window_params = [{transform_indices = @transform_0, window_bounds = array<i64: 8, 128>}, {transform_indices = @transform_1, window_bounds = array<i64: 128, 128>}, {transform_indices = @transform_2, window_bounds = array<i64: 1, 128>}, {transform_indices = @transform_3, window_bounds = array<i64: 8, 128>}]} {
    %c0_i32 = arith.constant 0 : i32
    %0 = arith.cmpi eq, %arg1, %c0_i32 : i32
    %1 = arith.extui %0 : i1 to i32
    %c0_i32_0 = arith.constant 0 : i32
    %2 = arith.cmpi ne, %1, %c0_i32_0 : i32
    scf.if %2 {
      %cst_19 = arith.constant 0xFF800000 : f32
      %32 = vector.broadcast %cst_19 : f32 to vector<8x1xf32>
      %c0_20 = arith.constant 0 : index
      %c0_21 = arith.constant 0 : index
      %33 = vector.load %arg6[%c0_20, %c0_21] : memref<8x1xf32, #tpu.memory_space<vmem>>, vector<8x1xf32>
      tpu.vector_store %arg6[%c0_20, %c0_21], %32 {strides = array<i32>} : memref<8x1xf32, #tpu.memory_space<vmem>>, vector<8x1xf32>,
      %cst_22 = arith.constant 0.000000e+00 : f32
      %34 = vector.broadcast %cst_22 : f32 to vector<8x1xf32>
      %c0_23 = arith.constant 0 : index
      %c0_24 = arith.constant 0 : index
      %35 = vector.load %arg7[%c0_23, %c0_24] : memref<8x1xf32, #tpu.memory_space<vmem>>, vector<8x1xf32>
      tpu.vector_store %arg7[%c0_23, %c0_24], %34 {strides = array<i32>} : memref<8x1xf32, #tpu.memory_space<vmem>>, vector<8x1xf32>,
    } else {
    }
    %c0 = arith.constant 0 : index
    %c0_1 = arith.constant 0 : index
    %3 = vector.load %arg2[%c0, %c0_1] : memref<8x128xbf16, #tpu.memory_space<vmem>>, vector<8x128xbf16>
    %c0_2 = arith.constant 0 : index
    %c0_3 = arith.constant 0 : index
    %4 = vector.load %arg3[%c0_2, %c0_3] : memref<128x128xbf16, #tpu.memory_space<vmem>>, vector<128x128xbf16>
    %cst = arith.constant dense<0.000000e+00> : vector<8x128xf32>
    %5 = tpu.matmul %3, %4, %cst {dimension_numbers = #tpu.dot_dimension_numbers<[1], [0], [0], [1], [0, 0, 1, 1], [], []>} : vector<8x128xbf16>, vector<128x128xbf16>, vector<8x128xf32> -> vector<8x128xf32>
    %c0_4 = arith.constant 0 : index
    %c0_5 = arith.constant 0 : index
    %6 = vector.load %arg4[%c0_4, %c0_5] : memref<1x128xf32, #tpu.memory_space<vmem>>, vector<1x128xf32>
    %7 = vector.broadcast %6 : vector<1x128xf32> to vector<8x128xf32>
    %8 = arith.addf %5, %7 : vector<8x128xf32>
    %c0_6 = arith.constant 0 : index
    %c0_7 = arith.constant 0 : index
    %9 = vector.load %arg6[%c0_6, %c0_7] : memref<8x1xf32, #tpu.memory_space<vmem>>, vector<8x1xf32>
    %cst_8 = arith.constant dense<0xFF800000> : vector<8xf32>
    %10 = vector.multi_reduction <maximumf>, %8, %cst_8 [1] : vector<8x128xf32> to vector<8xf32>
    %11 = vector.shape_cast %10 : vector<8xf32> to vector<8x1xf32>
    %12 = arith.maximumf %9, %11 : vector<8x1xf32>
    %c0_9 = arith.constant 0 : index
    %c0_10 = arith.constant 0 : index
    %13 = vector.load %arg7[%c0_9, %c0_10] : memref<8x1xf32, #tpu.memory_space<vmem>>, vector<8x1xf32>
    %14 = arith.subf %9, %12 : vector<8x1xf32>
    %15 = math.exp %14 : vector<8x1xf32>
    %16 = arith.mulf %13, %15 : vector<8x1xf32>
    %17 = vector.broadcast %12 : vector<8x1xf32> to vector<8x128xf32>
    %18 = arith.subf %8, %17 : vector<8x128xf32>
    %19 = math.exp %18 : vector<8x128xf32>
    %cst_11 = arith.constant dense<0.000000e+00> : vector<8xf32>
    %20 = vector.multi_reduction <add>, %19, %cst_11 [1] : vector<8x128xf32> to vector<8xf32>
    %21 = vector.shape_cast %20 : vector<8xf32> to vector<8x1xf32>
    %22 = arith.addf %16, %21 : vector<8x1xf32>
    %c0_12 = arith.constant 0 : index
    %c0_13 = arith.constant 0 : index
    %23 = vector.load %arg7[%c0_12, %c0_13] : memref<8x1xf32, #tpu.memory_space<vmem>>, vector<8x1xf32>
    tpu.vector_store %arg7[%c0_12, %c0_13], %22 {strides = array<i32>} : memref<8x1xf32, #tpu.memory_space<vmem>>, vector<8x1xf32>,
    %c0_14 = arith.constant 0 : index
    %c0_15 = arith.constant 0 : index
    %24 = vector.load %arg6[%c0_14, %c0_15] : memref<8x1xf32, #tpu.memory_space<vmem>>, vector<8x1xf32>
    tpu.vector_store %arg6[%c0_14, %c0_15], %12 {strides = array<i32>} : memref<8x1xf32, #tpu.memory_space<vmem>>, vector<8x1xf32>,
    %c128_i32 = arith.constant 128 : i32
    %25 = arith.muli %arg1, %c128_i32 : i32
    %26 = tpu.assume_multiple %25, 128 : i32
    %c0_16 = arith.constant 0 : index
    %27 = arith.index_cast %26 : i32 to index
    %28 = vector.load %arg5[%c0_16, %27] : memref<8x128xf32, #tpu.memory_space<vmem>>, vector<8x128xf32>
    tpu.vector_store %arg5[%c0_16, %27], %8 {strides = array<i32>} : memref<8x128xf32, #tpu.memory_space<vmem>>, vector<8x128xf32>,
    %c0_i32_17 = arith.constant 0 : i32
    %29 = arith.cmpi eq, %arg1, %c0_i32_17 : i32
    %30 = arith.extui %29 : i1 to i32
    %c0_i32_18 = arith.constant 0 : i32
    %31 = arith.cmpi ne, %30, %c0_i32_18 : i32
    scf.if %31 {
      %c0_19 = arith.constant 0 : index
      %c0_20 = arith.constant 0 : index
      %32 = vector.load %arg6[%c0_19, %c0_20] : memref<8x1xf32, #tpu.memory_space<vmem>>, vector<8x1xf32>
      %c0_21 = arith.constant 0 : index
      %c0_22 = arith.constant 0 : index
      %33 = vector.load %arg7[%c0_21, %c0_22] : memref<8x1xf32, #tpu.memory_space<vmem>>, vector<8x1xf32>
      %34 = math.log %33 : vector<8x1xf32>
      %35 = arith.addf %32, %34 : vector<8x1xf32>
      %c0_23 = arith.constant 0 : index
      %c0_24 = arith.constant 0 : index
      %36 = vector.load %arg5[%c0_23, %c0_24] : memref<8x128xf32, #tpu.memory_space<vmem>>, vector<8x128xf32>
      %37 = vector.broadcast %35 : vector<8x1xf32> to vector<8x128xf32>
      %38 = arith.subf %36, %37 : vector<8x128xf32>
      %c0_25 = arith.constant 0 : index
      %c0_26 = arith.constant 0 : index
      %39 = vector.load %arg5[%c0_25, %c0_26] : memref<8x128xf32, #tpu.memory_space<vmem>>, vector<8x128xf32>
      tpu.vector_store %arg5[%c0_25, %c0_26], %38 {strides = array<i32>} : memref<8x128xf32, #tpu.memory_space<vmem>>, vector<8x128xf32>,
    } else {
    }
    return
  }
  func.func @transform_0(%arg0: i32, %arg1: i32) -> (i32, i32) {
    %c0_i32 = arith.constant 0 : i32
    %c0_i32_0 = arith.constant 0 : i32
    return %arg0, %c0_i32 : i32, i32
  }
  func.func @transform_1(%arg0: i32, %arg1: i32) -> (i32, i32) {
    %c0_i32 = arith.constant 0 : i32
    %c0_i32_0 = arith.constant 0 : i32
    return %c0_i32, %arg1 : i32, i32
  }
  func.func @transform_2(%arg0: i32, %arg1: i32) -> (i32, i32) {
    %c0_i32 = arith.constant 0 : i32
    %c0_i32_0 = arith.constant 0 : i32
    return %c0_i32, %arg1 : i32, i32
  }
  func.func @transform_3(%arg0: i32, %arg1: i32) -> (i32, i32) {
    %c0_i32 = arith.constant 0 : i32
    %c0_i32_0 = arith.constant 0 : i32
    return %arg0, %c0_i32 : i32, i32
  }
}

</mosaic_0001>

<bundles_post_ra>
// kernel: tpu_custom_call.1
= control target key start
LH: loop header
LB: loop body
LE: loop exit
PB: predicated region body
PF: predicated region fallthrough
CT: control target
= control target key end

     0   :  { %8 = vsyncpa [#allocation5], 0  ;;  %s958_s0 = inlined_call_operand.hbm [shape: bf16[16,128], index: 0, kind: input, shape index: {}]   ;;  %s959_s1 = inlined_call_operand.hbm [shape: bf16[128,128], index: 1, kind: input, shape index: {}]   ;;  %s960_s2 = inlined_call_operand.vmem [shape: f32[1,128], index: 2, kind: input, shape index: {}]   ;;  %s961_s3 = inlined_call_operand.hbm [shape: f32[16,128], index: 3, kind: output, shape index: {}]  }
   0x1   :  { %10 = vsyncpa [#allocation5 + $0x1], 0 }
   0x2   :  { %11 = vsyncpa [#allocation8], 0 }
   0x3   :  { %12 = vsyncpa [#allocation6], 0 }
   0x4   :  { %14 = vsyncpa [#allocation6 + $0x1], 0  ;;  %s807_s12 = smov 0   ;;  %s809_s13 = smov 0  }
   0x5   :  { %s811_s14 = smov 0   ;;  %s813_s15 = smov 0  }
   0x6   :  { %s815_s16 = smov 0   ;;  %s817_s17 = smov 0  }
   0x7 LB: > { %s490_s18 = sadd.s32 4294967295, %s779_s17   ;;  %p492_p0 = scmp.ge.s32.totalorder %s779_s17, 1  ;;  %s779_s17 = sphi %s817_s17, %s20_s17   ;;  %s775_s16 = sphi %s815_s16, %s972_s16   ;;  %s771_s15 = sphi %s813_s15, %s971_s15   ;;  %s767_s14 = sphi %s811_s14, %s970_s14   ;;  %s763_s13 = sphi %s809_s13, %s969_s13   ;;  %s759_s12 = sphi %s807_s12, %s968_s12  }
   0x8   : > { %p839_p1 = scmp.eq.s32.totalorder %s490_s18, 0  ;;  %p141_p2 = scmp.lt.s32.totalorder %s779_s17, 3 }
   0x9   : > { %s154_s22 = sshll.u32 %s959_s1, 4  ;;  %s781_s24 = smov [#allocation7]   ;;  %s155_s22 = int_to_ptr.hbm [resolvable:$true] %s154_s22 }
   0xa   : > { %p847_p3 = pnand %p492_p0, %p141_p2  ;;  %s156_s25 = sshll.u32 %s781_s24, 4  ;;  %s157_s25 = int_to_ptr.vmem [resolvable:$true] %s156_s25 }
   0xb   : > { %p495_p6 = scmp.ge.s32.totalorder %s779_s17, 2  ;;  %s782_s26 = smov 64  }
   0xc   : > { %p554_p4 = pneg %p847_p3  ;;  %s783_s27 = smov 4  }
   0xd   : > { %s491_s28 = sadd.s32 4294967294, %s779_s17   ;;  %s32_s29 = sadd.s32 1, %s775_s16 }
   0xe   : > { %p555_p5 = pnand %p554_p4, %p839_p1  ;;  %s39_s30 = sadd.s32 1, %s767_s14 }
   0xf   : > { %p34_p7 = scmp.ge.s32.totalorder %s32_s29, 2  ;;  %p46_p8 = scmp.ne.s32.totalorder %s767_s14, %s763_s13 }
  0x10   : > { %557 = dma.hbm_to_vmem [thread:$0]  (!%p555_p5), %s155_s22, 1024, %s157_s25, [#allocation8], %s782_s26, %s782_s26, %s783_s27  }
  0x11   : > { %p47_p9 = scmp.eq.s32.totalorder %s779_s17, 0  ;;  %p52_p10 = scmp.ne.s32.totalorder %s763_s13, %s759_s12 }
  0x12   : > { %s974_s29 = smov (%p34_p7, %s32_s29), 0  ;;  %p128_p13 = scmp.eq.s32.totalorder %s490_s18, 1 }
  0x13   : > { %p866_p11 = por %p47_p9, %p46_p8  ;;  %p872_p12 = por %p839_p1, %p52_p10 }
  0x14   : > { %s36_s6 = ssub.s32 %s775_s16, %s974_s29  ;;  %p134_p2 = scmp.eq.s32.totalorder %s491_s28, 1 }
  0x15   : > { %p37_p0 = scmp.eq.s32.totalorder %s36_s6, 0  ;;  %p878_p4 = por %p128_p13, %p46_p8 }
  0x16   : > { %p567_p5 = scmp.lt.s32.totalorder %s779_s17, 2  ;;  %p886_p7 = por %p134_p2, %p52_p10 }
  0x17   : > { %s884_s8 = scalar_select %p37_p0, %s767_s14, %s39_s30  }
  0x18   : > { %s176_s10 = sand.u32 1, %s767_s14   ;;  %s497_s20 = sshll.u32 %s775_s16, 2 }
  0x19   : > { %s496_s11 = sshll.u32 %s176_s10, 2  ;;  %s184_s18 = scalar_lea.hbm %s958_s0, %s497_s20 }
  0x1a   : > { %s180_s24 = scalar_lea.vmem [#allocation4], %s496_s11  ;;  %s186_s26 = sshll.u32 %s184_s18, 4  ;;  %s187_s26 = int_to_ptr.hbm [resolvable:$true] %s186_s26 }
  0x1b   : > { %s188_s25 = sshll.u32 %s180_s24, 4  ;;  %p559_p8 = pnand %p567_p5, %p866_p11  ;;  %s189_s25 = int_to_ptr.vmem [resolvable:$true] %s188_s25 }
  0x1c   : > { %s177_s27 = scalar_lea.sflag [#allocation5], %s176_s10  ;;  %197 = sbr.rel (%p847_p3) target bundleno = 697 (0x2b9), region = 32 }
  0x1d   : > { %561 = dma.hbm_to_vmem [thread:$0]  (!%p559_p8), %s187_s26, 64, %s189_s25, %s177_s27  }
  0x1e   : > { %s900_s28 = sand.u32 (!%p847_p3), 1, %s763_s13  }
  0x1f   : > { %s499_s30 = sshll.u32 (!%p847_p3), %s900_s28, 2  ;;  %s200_s6 = scalar_lea.sflag (!%p847_p3), [#allocation5], %s900_s28 }
  0x20   : > { %s203_s11 = scalar_lea.vmem (!%p847_p3), [#allocation4], %s499_s30 }
  0x21   : > { %746 = dma.done.wait (%p872_p12), %s200_s6, 64  }
  0x22   : > { %748 = vsyncadd (%p872_p12), %s200_s6, 4294967232 }
  0x23   : > { %750 = dma.done.wait (%p839_p1), [#allocation8], 1024  }
  0x24   : > { %752 = vsyncadd (%p839_p1), [#allocation8], 4294966272  ;;  %v545_v0 = vld [vmem:[#allocation7 + $0x38] sm:$0xff]  ;;  %v544_v1 = vld [vmem:[#allocation7 + $0x30] sm:$0xff]  ;;  %vm242_vm0 = vcmask 7168   ;;  %v784_v9 = vmov -inf  }
  0x25   : > { %314 = vmatpush.bf16.msra.mxu0 %v545_v0  ;;  %v543_v2 = vld [vmem:[#allocation7 + $0x28] sm:$0xff]  ;;  %v542_v3 = vld [vmem:[#allocation7 + $0x20] sm:$0xff]  ;;  %v541_v4 = vld [vmem:[#allocation7 + $0x18] sm:$0xff]  ;;  %243 = vst.msk [vmem:[#allocation2] sm:$0xff] %vm242_vm0, %v784_v9  ;;  %v785_v14 = vmov 0   ;;  %v786_v15 = vmov 0.0  }
  0x26   : > { %v540_v5 = vld [vmem:[#allocation7 + $0x10] sm:$0xff]  ;;  %v539_v6 = vld [vmem:[#allocation7 + $0x8] sm:$0xff]  ;;  %v538_v7 = vld [vmem:[#allocation7] sm:$0xff]  ;;  %624 = vset.pattern.permute.xlu0 %v785_v14  ;;  %625 = vset.pattern.permute.xlu1 %v785_v14  ;;  %244 = vst.msk [vmem:[#allocation3] sm:$0xff] %vm242_vm0, %v786_v15  ;;  %s501_s4 = sshll.u32 %s900_s28, 3  ;;  %s535_s5 = sshll.u32 %s771_s15, 3 }
  0x27   : > { %v245_v8 = vld [vmem:[%s203_s11] sm:$0xf]  ;;  %v626_v10 = vld [vmem:[%s960_s2] ss:$0 sm:$0xff]  ;;  %s382_s21 = scalar_lea.hbm %s961_s3, %s535_s5  ;;  %s234_s22 = scalar_lea.vmem [#allocation9], %s501_s4 }
  0x28   : > { %s384_s18 = sshll.u32 %s234_s22, 4  ;;  %s386_s24 = sshll.u32 %s382_s21, 4  ;;  %s385_s18 = int_to_ptr.vmem [resolvable:$true] %s384_s18  ;;  %s387_s24 = int_to_ptr.hbm [resolvable:$true] %s386_s24 }
  0x29   : > { %315 = vmatpush.bf16.msra.mxu0 %v544_v1  ;;  %s372_s25 = scalar_lea.sflag [#allocation6], %s900_s28  ;;  %s707_s26 = sshra.s32 %s387_s24, 4  ;;  %s708_s26 = int_to_ptr.hbm [resolvable:$true] %s707_s26 }
  0x2a   : > { %s709_s27 = scalar_lea.hbm %s708_s26, 8  ;;  %s713_s6 = scalar_lea.hbm %s961_s3, 16 }
  0x2b   : > { %p710_p1 = scmp.ne.s32.totalorder %s708_s26, %s709_s27  ;;  %p714_p10 = scmp.lt.s32.totalorder %s708_s26, %s961_s3 }
  0x2c   : > { %v327_v16 = vld [vmem:[#allocation2] sm:$0xff]  ;;  %p715_p11 = scmp.lt.s32.totalorder %s713_s6, %s709_s27 }
  0x2d   : > { %316 = vmatpush.bf16.msra.mxu0 %v543_v2  ;;  %v331_v26 = vld [vmem:[#allocation3] sm:$0xff]  ;;  %p711_p3 = pnand %p710_p1, %p878_p4 }
  0x2e   : > { %p716_p12 = por %p715_p11, %p714_p10 }
  0x2f   : > { %p712_p9 = pneg %p711_p3 }
  0x31   : > { %317 = vmatpush.bf16.msra.mxu0 %v542_v3  ;;  %p717_p13 = pnand %p716_p12, %p712_p9 }
  0x35   : > { %318 = vmatpush.bf16.msra.mxu0 %v541_v4 }
  0x39   : > { %319 = vmatpush.bf16.msra.mxu0 %v540_v5 }
  0x3d   : > { %320 = vmatpush.bf16.msra.mxu0 %v539_v6 }
  0x41   : > { %321 = vmatpush.bf16.msra.mxu0 %v538_v7 }
  0x44   : > { %322 = vmatmul.bf16.vlgmr.msra.gmra.mxu0 %v245_v8 }
  0xc1   : > { %v323_v11 = vpop.f32.mrf.mxu0 }
  0xc2   : > { %v324_v12 = vadd.f32 %v626_v10, %v323_v11 }
  0xc4   : > { %328 = vmax.xlane.f32.xlu0 %v324_v12 }
  0xc9   : > { %v325_v13 = vpop.f32.mrf.mxu0 }
 0x137   : > { %v329_v17 = vpop.xlane.xlu0 %328 }
 0x138   : > { %v330_v18 = vmax.f32 %v327_v16, %v329_v17 }
 0x13a   : > { %v332_v19 = vsub.f32 %v327_v16, %v330_v18  ;;  %349 = vst.msk [vmem:[#allocation2] sm:$0xff] %vm242_vm0, %v330_v18  ;;  %338 = vperm.xlu0 %624, %v330_v18  }
 0x13c   : > { %v333_v24 = vmul.f32 1.442695, %v332_v19 }
 0x141   : > { %v358_v33 = vld [vmem:[#allocation2] sm:$0xff] }
 0x1ac   : > { %v339_v20 = vpop.permute.xlu0 %338 }
 0x1ad   : > { %v341_v21 = vsub.f32 %v324_v12, %v339_v20 }
 0x1af   : > { %v342_v22 = vmul.f32 1.442695, %v341_v21 }
 0x1b1   : > { %627 = vpow2.f32 %v342_v22 }
 0x1b2   : > { %629 = vpow2.f32 %v333_v24 }
 0x1b7   : > { %v628_v23 = vpop.eup %627 }
 0x1b8   : > { %344 = vadd.xlane.f32.xlu1 %v628_v23  ;;  %v630_v25 = vpop.eup %629 }
 0x1b9   : > { %v335_v27 = vmul.f32 %v630_v25, %v331_v26 }
 0x22b   : > { %v345_v28 = vpop.xlane.xlu1 %344 }
 0x22c   : > { %v346_v29 = vadd.f32 %v345_v28, %v335_v27 }
 0x22e   : > { %348 = vst.msk [vmem:[#allocation3] sm:$0xff] %vm242_vm0, %v346_v29 }
 0x235   : > { %v359_v30 = vld [vmem:[#allocation3] sm:$0xff] }
 0x236   : > { %631 = vlog2.f32 %v359_v30 }
 0x23c   : > { %v632_v31 = vpop.eup %631 }
 0x23d   : > { %v361_v32 = vmul.f32 0.6931472, %v632_v31 }
 0x23f   : > { %v362_v34 = vadd.f32 %v361_v32, %v358_v33 }
 0x241   : > { %366 = vperm.xlu1 %625, %v362_v34  }
 0x2b3   : > { %v367_v35 = vpop.permute.xlu1 %366 }
 0x2b4   : > { %v369_v36 = vsub.f32 %v324_v12, %v367_v35 }
 0x2b6   : > { %370 = vst [vmem:[%s234_s22] sm:$0xff] %v369_v36 }
 0x2b7   : > { %720 = shalt.err (!%p717_p13)
}
 0x2b8   : > { %552 = dma.vmem_to_hbm [thread:$0]  (%p878_p4), %s385_s18, 128, %s387_s24, %s372_s25  }
 0x2b9 PF: > { %s398_s28 = sand.u32 1, %s759_s12   ;;  %p563_p0 = pnand %p495_p6, %p886_p7 }
 0x2ba   : > { %s399_s23 = scalar_lea.sflag [#allocation6], %s398_s28 }
 0x2bb   : > { %p564_p2 = pneg %p563_p0 }
 0x2bd   : > { %754 = dma.done.wait (%p564_p2), %s399_s23, 128  }
 0x2be   : > { %756 = vsyncadd (%p564_p2), %s399_s23, 4294967168  ;;  %s20_s17 = sadd.s32 1, %s779_s17   ;;  %s968_s12 = smov %s763_s13 }
 0x2bf   : > { %p17_p5 = scmp.ge.s32.totalorder %s20_s17, 4   ;;  %s969_s13 = smov %s767_s14 }
 0x2c0   : > { %s970_s14 = smov %s884_s8  ;;  %s971_s15 = smov %s775_s16 }
 0x2c1   : > { %s972_s16 = smov %s974_s29  ;;  %19 = sbr.rel (!%p17_p5) target bundleno = 7 (0x7), region = 94 }
 0x2c6   :  { %405 = vsyncpa [#allocation5], 1 }
 0x2c7   :  { %407 = vsyncpa [#allocation5 + $0x1], 1 }
 0x2c8   :  { %408 = vsyncpa [#allocation8], 1 }
 0x2c9   :  { %409 = vsyncpa [#allocation6], 1 }
 0x2ca   :  { %411 = vsyncpa [#allocation6 + $0x1], 1 }

</bundles_post_ra>
